<compile_context>
chip_gen: v5e
topology: v5e:2x2
jax: 0.10.0
libtpu: 0.0.40
codegen_flags: <defaults>
</compile_context>

<pallas_src>
import functools

import jax
import jax.numpy as jnp
from jax.experimental import pallas as pl
from jax.experimental.pallas import tpu as pltpu


def _round_up(v, m):
    return ((v + m - 1) // m) * m


def _vmem_capacity_bytes():
    try:
        cap = int(pltpu.get_tpu_info().vmem_capacity_bytes)
        if cap > 0:
            return cap
    except Exception:
        pass
    return 64 << 20  # conservative (v7x per-TC VMEM)


# ---------------------------------------------------------------------------
# Single-pass kernel: one grid step = tile_r rows x full (real) HW columns.
# ---------------------------------------------------------------------------
def _htdc_kernel(x_ref, ab_ref, o_ref, *, inv_hw, tile_r, ab_resident):
    if ab_resident:
        # ab is grid-resident (full array in VMEM); slice this step's rows.
        r0 = pl.multiple_of(pl.program_id(0) * tile_r, 8)
        ab = ab_ref[pl.ds(r0, tile_r), :]
    else:
        ab = ab_ref[...]
    a = ab[:, 0:1]  # (tile_r, 1) f32 : fscale_d - fscale_h - 1
    b = ab[:, 1:2]  # (tile_r, 1) f32 : fscale_h + 1

    # GAP over the real row (no column padding).  x_ref is read here once ...
    mean = jnp.sum(x_ref[...].astype(jnp.float32), axis=-1, keepdims=True) * inv_hw
    # ... and again here, so the casted f32 tile never has to stay live across
    # both uses (VMEM reloads are free; this op is HBM-bandwidth bound).
    o_ref[...] = (x_ref[...].astype(jnp.float32) * b + mean * a).astype(o_ref.dtype)


# ---------------------------------------------------------------------------
# Two-pass fallback for very large H*W: column-chunked row means, then apply.
# ---------------------------------------------------------------------------
def _rowmean_kernel(x_ref, m_ref, acc_ref, *, inv_hw, tile_c, hw):
    j = pl.program_id(1)

    @pl.when(j == 0)
    def _():
        acc_ref[...] = jnp.zeros_like(acc_ref)

    x = x_ref[...].astype(jnp.float32)
    if hw % tile_c != 0:
        # Mask the ragged last column block so garbage lanes don't pollute the sum.
        col = jax.lax.broadcasted_iota(jnp.int32, x.shape, 1) + j * tile_c
        x = jnp.where(col < hw, x, 0.0)
    acc_ref[...] += jnp.sum(x, axis=-1, keepdims=True)

    @pl.when(j == pl.num_programs(1) - 1)
    def _():
        m_ref[...] = acc_ref[...] * inv_hw


def _apply_kernel(x_ref, m_ref, ab_ref, o_ref):
    a = ab_ref[:, 0:1]
    b = ab_ref[:, 1:2]
    o_ref[...] = (x_ref[...].astype(jnp.float32) * b
                  + m_ref[...] * a).astype(o_ref.dtype)


# ---------------------------------------------------------------------------
# Wrappers
# ---------------------------------------------------------------------------
def _single_pass(x2, ab, out_shape4, itemsize, inv_hw, target_block_bytes, cap, budget):
    R, HW = x2.shape
    row_bytes = HW * itemsize

    # Rows per block: as many as the VMEM budget allows (2x in + 2x out bufs)...
    tile_r = max(8, (min(target_block_bytes, budget // 4) // row_bytes) // 8 * 8)
    # ...but keep >= 8 grid steps when there is enough work (v7x megacore).
    tile_r = min(tile_r, max(8, _round_up(pl.cdiv(R, 8), 8)))
    tile_r = min(tile_r, _round_up(R, 8))

    steps = pl.cdiv(R, tile_r)
    # Mild preference for an even step count so both v7x TensorCores balance.
    if steps % 2 == 1 and steps >= 3 and tile_r > 8:
        cand = tile_r - 8
        if pl.cdiv(R, cand) % 2 == 0:
            tile_r = cand
            steps = pl.cdiv(R, cand)

    # Grid-resident ab when small (removes a per-step micro-DMA); per-step
    # block otherwise so a huge R doesn't burn VMEM on resident coefficients.
    ab_resident = (steps * tile_r) <= 1024
    if ab_resident:
        r_ab = steps * tile_r
        if r_ab != R:
            ab = jnp.pad(ab, ((0, r_ab - R), (0, 0)))  # tiny (R,2) f32 pad
        ab_spec = pl.BlockSpec((r_ab, 2), lambda i: (0, 0))
        ab_vmem = _round_up(r_ab, 8) * 128 * 4 * 2
    else:
        ab_spec = pl.BlockSpec((tile_r, 2), lambda i: (i, 0))
        ab_vmem = tile_r * 128 * 4 * 2

    block_bytes = tile_r * HW * itemsize
    needed = 4 * block_bytes + ab_vmem + (2 << 20)
    vmem_limit = int(min(max(needed, 16 << 20), cap))

    cost = pl.CostEstimate(
        flops=3 * R * HW,
        transcendentals=0,
        bytes_accessed=2 * R * HW * itemsize + R * 8,
    )

    kernel = functools.partial(
        _htdc_kernel, inv_hw=inv_hw, tile_r=tile_r, ab_resident=ab_resident)

    out2 = pl.pallas_call(
        kernel,
        out_shape=jax.ShapeDtypeStruct((R, HW), x2.dtype),
        grid_spec=pltpu.PrefetchScalarGridSpec(
            num_scalar_prefetch=0,
            grid=(steps,),
            in_specs=[
                pl.BlockSpec((tile_r, HW), lambda i: (i, 0)),
                ab_spec,
            ],
            out_specs=pl.BlockSpec((tile_r, HW), lambda i: (i, 0)),
        ),
        compiler_params=pltpu.CompilerParams(
            dimension_semantics=("parallel",),
            vmem_limit_bytes=vmem_limit,
        ),
        cost_estimate=cost,
    )(x2, ab)

    return out2.reshape(out_shape4)


def _two_pass(x2, ab, out_shape4, itemsize, inv_hw, target_block_bytes, cap):
    R, HW = x2.shape
    tile_r = 8
    tile_c = max(128, (target_block_bytes // (tile_r * itemsize)) // 128 * 128)
    if tile_c >= HW:
        tile_c = HW  # single column block (full-dim block is always legal)
    n_r = pl.cdiv(R, tile_r)
    n_c = pl.cdiv(HW, tile_c)

    block_bytes = tile_r * tile_c * itemsize
    vmem_limit = int(min(max(4 * block_bytes + (4 << 20), 16 << 20), cap))

    # Pass 1: per-row spatial means (column-chunked reduction).
    means = pl.pallas_call(
        functools.partial(_rowmean_kernel, inv_hw=inv_hw, tile_c=tile_c, hw=HW),
        out_shape=jax.ShapeDtypeStruct((R, 1), jnp.float32),
        grid_spec=pltpu.PrefetchScalarGridSpec(
            num_scalar_prefetch=0,
            grid=(n_r, n_c),
            in_specs=[pl.BlockSpec((tile_r, tile_c), lambda i, j: (i, j))],
            out_specs=pl.BlockSpec((tile_r, 1), lambda i, j: (i, 0)),
            scratch_shapes=[pltpu.VMEM((tile_r, 1), jnp.float32)],
        ),
        compiler_params=pltpu.CompilerParams(
            dimension_semantics=("parallel", "arbitrary"),
            vmem_limit_bytes=vmem_limit,
        ),
        cost_estimate=pl.CostEstimate(
            flops=R * HW, transcendentals=0,
            bytes_accessed=R * HW * itemsize + R * 4),
    )(x2)

    # Pass 2: out = x * b + mean * a (pure streaming elementwise).
    out2 = pl.pallas_call(
        _apply_kernel,
        out_shape=jax.ShapeDtypeStruct((R, HW), x2.dtype),
        grid_spec=pltpu.PrefetchScalarGridSpec(
            num_scalar_prefetch=0,
            grid=(n_r, n_c),
            in_specs=[
                pl.BlockSpec((tile_r, tile_c), lambda i, j: (i, j)),
                pl.BlockSpec((tile_r, 1), lambda i, j: (i, 0)),
                pl.BlockSpec((tile_r, 2), lambda i, j: (i, 0)),
            ],
            out_specs=pl.BlockSpec((tile_r, tile_c), lambda i, j: (i, j)),
        ),
        compiler_params=pltpu.CompilerParams(
            dimension_semantics=("parallel", "parallel"),
            vmem_limit_bytes=vmem_limit,
        ),
        cost_estimate=pl.CostEstimate(
            flops=3 * R * HW, transcendentals=0,
            bytes_accessed=2 * R * HW * itemsize + R * 12),
    )(x2, means, ab)

    return out2.reshape(out_shape4)


def high_threshold_dc(x, fscale_d, fscale_h, *,
                      target_block_bytes=None, force_two_pass=False):
    """x: (N, C, H, W); fscale_d, fscale_h: (C,). Returns (N, C, H, W)."""
    N, C, H, W = x.shape
    HW = H * W
    R = N * C
    itemsize = jnp.dtype(x.dtype).itemsize
    inv_hw = float(1.0 / HW)

    cap = _vmem_capacity_bytes()
    budget = int(cap * 0.55)  # for double-buffered input + output blocks
    if target_block_bytes is None:
        # ~8 MiB blocks on 128-MiB parts (v5e/v6e), ~5 MiB on v7x (64 MiB).
        target_block_bytes = min(8 << 20, cap // 12)
    target_block_bytes = max(int(target_block_bytes), 8 * 128 * itemsize)

    # Row view: one row per (n, c) slice, flattened over spatial dims.
    x2 = x.reshape(R, HW)

    # Per-row affine coefficients, kept in float32 (no double rounding for
    # bf16/fp8 inputs):  out = x * b + mean * a.
    a = fscale_d.astype(jnp.float32) - fscale_h.astype(jnp.float32) - 1.0
    b = fscale_h.astype(jnp.float32) + 1.0
    ab = jnp.stack([jnp.tile(a, N), jnp.tile(b, N)], axis=-1)  # (R, 2) f32

    out_shape4 = (N, C, H, W)
    # If even a minimal (8-row, full-width) block can't be double-buffered in
    # VMEM (huge H*W, relevant on v7x), use the column-tiled two-pass path.
    if force_two_pass or (4 * 8 * HW * itemsize > budget):
        return _two_pass(x2, ab, out_shape4, itemsize, inv_hw,
                         target_block_bytes, cap)
    return _single_pass(x2, ab, out_shape4, itemsize, inv_hw,
                        target_block_bytes, cap, budget)


def _reference(x, fscale_d, fscale_h):
    x_d = jnp.mean(x, axis=(2, 3), keepdims=True)
    x_h = (x - x_d) * (fscale_h[None, :, None, None] + 1.0)
    x_d = x_d * fscale_d[None, :, None, None]
    return x_d + x_h


if __name__ == "__main__":
    key = jax.random.PRNGKey(0)
    N, C, H, W = 2, 4, 16, 16
    x = jax.random.normal(key, (N, C, H, W), dtype=jnp.float32)

    # nn.Parameter(torch.zeros(C)) in the module; small deterministic non-zero
    # values here so the math is actually exercised.
    fscale_d = (jnp.arange(C, dtype=jnp.float32) * 0.1) - 0.15
    fscale_h = (jnp.arange(C, dtype=jnp.float32) * 0.05) + 0.02

    out = jax.block_until_ready(high_threshold_dc(x, fscale_d, fscale_h))
    ref = _reference(x, fscale_d, fscale_h)
    assert out.shape == (N, C, H, W)
    assert jnp.allclose(out, ref, atol=1e-5, rtol=1e-5)

    # Ragged row count + non-128-multiple spatial size: exercises the
    # no-padding single-pass path with a partial last row block.
    x2 = jax.random.normal(jax.random.PRNGKey(1), (3, 5, 7, 7), dtype=jnp.float32)
    d2 = (jnp.arange(5, dtype=jnp.float32) * 0.03) - 0.1
    h2 = (jnp.arange(5, dtype=jnp.float32) * 0.02) + 0.01
    out2 = jax.block_until_ready(high_threshold_dc(x2, d2, h2))
    assert jnp.allclose(out2, _reference(x2, d2, h2), atol=1e-5, rtol=1e-5)

    # Column-tiled two-pass fallback (used for very large H*W on 64-MiB VMEM
    # parts); forced here at a small shape so the path (incl. column masking
    # and the ragged row block) is compiled and verified.
    x3 = jax.random.normal(jax.random.PRNGKey(2), (2, 3, 10, 20), dtype=jnp.float32)
    d3 = (jnp.arange(3, dtype=jnp.float32) * 0.07) - 0.05
    h3 = (jnp.arange(3, dtype=jnp.float32) * 0.04) + 0.03
    out3 = jax.block_until_ready(
        high_threshold_dc(x3, d3, h3, force_two_pass=True,
                          target_block_bytes=8 * 128 * 4))
    assert jnp.allclose(out3, _reference(x3, d3, h3), atol=1e-5, rtol=1e-5)

    print("KERNEL_OK")
</pallas_src>

<mosaic_0001>
module attributes {stable_mosaic.version = 11 : i64} {
  func.func @_htdc_kernel(%arg0: i32, %arg1: memref<8x256xf32, #tpu.memory_space<vmem>>, %arg2: memref<8x2xf32, #tpu.memory_space<vmem>>, %arg3: memref<8x256xf32, #tpu.memory_space<vmem>>) attributes {dimension_semantics = [#tpu.dimension_semantics<parallel>], iteration_bounds = array<i64: 1>, scalar_prefetch = 0 : i64, scratch_operands = 0 : i64, tpu.core_type = #tpu.core_type<tc>, window_params = [{transform_indices = @transform_0, window_bounds = array<i64: 8, 256>}, {pipeline_mode = #tpu.pipeline_mode<synchronous>, transform_indices = @transform_1, window_bounds = array<i64: 8, 2>}, {transform_indices = @transform_2, window_bounds = array<i64: 8, 256>}]} {
    %c8_i32 = arith.constant 8 : i32
    %0 = arith.muli %arg0, %c8_i32 : i32
    %1 = tpu.assume_multiple %0, 8 : i32
    %2 = arith.index_cast %1 : i32 to index
    %c0 = arith.constant 0 : index
    %3 = vector.load %arg2[%2, %c0] : memref<8x2xf32, #tpu.memory_space<vmem>>, vector<8x2xf32>
    %4 = vector.extract_strided_slice %3 {offsets = [0, 0], sizes = [8, 1], strides = [1, 1]} : vector<8x2xf32> to vector<8x1xf32>
    %5 = vector.extract_strided_slice %3 {offsets = [0, 1], sizes = [8, 1], strides = [1, 1]} : vector<8x2xf32> to vector<8x1xf32>
    %c0_0 = arith.constant 0 : index
    %c0_1 = arith.constant 0 : index
    %6 = vector.load %arg1[%c0_0, %c0_1] : memref<8x256xf32, #tpu.memory_space<vmem>>, vector<8x256xf32>
    %cst = arith.constant dense<0.000000e+00> : vector<8xf32>
    %7 = vector.multi_reduction <add>, %6, %cst [1] : vector<8x256xf32> to vector<8xf32>
    %8 = vector.shape_cast %7 : vector<8xf32> to vector<8x1xf32>
    %cst_2 = arith.constant 3.906250e-03 : f32
    %9 = vector.broadcast %cst_2 : f32 to vector<8x1xf32>
    %10 = arith.mulf %8, %9 : vector<8x1xf32>
    %c0_3 = arith.constant 0 : index
    %c0_4 = arith.constant 0 : index
    %11 = vector.load %arg1[%c0_3, %c0_4] : memref<8x256xf32, #tpu.memory_space<vmem>>, vector<8x256xf32>
    %12 = vector.broadcast %5 : vector<8x1xf32> to vector<8x256xf32>
    %13 = arith.mulf %11, %12 : vector<8x256xf32>
    %14 = arith.mulf %10, %4 : vector<8x1xf32>
    %15 = vector.broadcast %14 : vector<8x1xf32> to vector<8x256xf32>
    %16 = arith.addf %13, %15 : vector<8x256xf32>
    %c0_5 = arith.constant 0 : index
    %c0_6 = arith.constant 0 : index
    %17 = vector.load %arg3[%c0_5, %c0_6] : memref<8x256xf32, #tpu.memory_space<vmem>>, vector<8x256xf32>
    tpu.vector_store %arg3[%c0_5, %c0_6], %16 {strides = array<i32>} : memref<8x256xf32, #tpu.memory_space<vmem>>, vector<8x256xf32>,
    return
  }
  func.func @transform_0(%arg0: i32) -> (i32, i32) {
    %c0_i32 = arith.constant 0 : i32
    %c0_i32_0 = arith.constant 0 : i32
    return %arg0, %c0_i32 : i32, i32
  }
  func.func @transform_1(%arg0: i32) -> (i32, i32) {
    %c0_i32 = arith.constant 0 : i32
    %c0_i32_0 = arith.constant 0 : i32
    %c0_i32_1 = arith.constant 0 : i32
    return %c0_i32, %c0_i32_0 : i32, i32
  }
  func.func @transform_2(%arg0: i32) -> (i32, i32) {
    %c0_i32 = arith.constant 0 : i32
    %c0_i32_0 = arith.constant 0 : i32
    return %arg0, %c0_i32 : i32, i32
  }
}

</mosaic_0001>

<bundles_post_ra>
// kernel: tpu_custom_call.1
= control target key start
LH: loop header
LB: loop body
LE: loop exit
PB: predicated region body
PF: predicated region fallthrough
CT: control target
= control target key end

     0   :  { %7 = vsyncpa [#allocation3], 0  ;;  %s156_s0 = inlined_call_operand.hbm [shape: f32[8,256], index: 0, kind: input, shape index: {}]   ;;  %s157_s1 = inlined_call_operand.vmem [shape: f32[8,2], index: 1, kind: input, shape index: {}]   ;;  %s158_s2 = inlined_call_operand.hbm [shape: f32[8,256], index: 2, kind: output, shape index: {}]  }
   0x1   :  { %8 = vsyncpa [#allocation4], 0  ;;  %s14_s11 = sshll.u32 %s156_s0, 4  ;;  %s128_s12 = smov [#allocation2]   ;;  %s15_s11 = int_to_ptr.hbm [resolvable:$true] %s14_s11 }
   0x2   :  { %s16_s13 = sshll.u32 %s128_s12, 4  ;;  %s17_s13 = int_to_ptr.vmem [resolvable:$true] %s16_s13 }
   0x3   :  { %19 = dma.hbm_to_vmem [thread:$0]  %s15_s11, 256, %s17_s13, [#allocation3]  }
   0x4   :  { %124 = dma.done.wait [#allocation3], 256  }
   0x5   :  { %125 = vsyncadd [#allocation3], 4294967040  ;;  %v29_v0 = vld [vmem:[#allocation2] sm:$0xff]  ;;  %v30_v1 = vld [vmem:[#allocation2 + $0x8] sm:$0xff]  ;;  %v129_v4 = vmov 1   ;;  %v130_v5 = vmov 0  }
   0x6   :  { %v31_v2 = vadd.f32 %v30_v1, %v29_v0  ;;  %v28_v3 = vld [vmem:[%s157_s1] sm:$0xff]  ;;  %73 = vset.pattern.permute.xlu0 %v129_v4  ;;  %74 = vset.pattern.permute.xlu1 %v130_v5  ;;  %s131_s0 = smov [#allocation5]   ;;  %s59_s19 = sshll.u32 %s158_s2, 4  ;;  %s60_s19 = int_to_ptr.hbm [resolvable:$true] %s59_s19 }
   0x7   :  { %s57_s16 = sshll.u32 %s131_s0, 4  ;;  %s58_s16 = int_to_ptr.vmem [resolvable:$true] %s57_s16 }
   0x8   :  { %32 = vadd.xlane.f32.xlu0 %v31_v2 }
  0x1c   :  { %37 = vperm.xlu0 %73, %v28_v3  }
  0x24   :  { %75 = vset.pattern.permute.xlu0 %v130_v5 }
  0x7b   :  { %v33_v6 = vpop.xlane.xlu0 %32 }
  0x7c   :  { %v34_v7 = vmul.f32 0.00390625, %v33_v6 }
  0x7e   :  { %v42_v8 = vmul.f32 %v34_v7, %v28_v3 }
  0x80   :  { %45 = vperm.xlu1 %74, %v42_v8  }
  0x8e   :  { %v38_v9 = vpop.permute.xlu0 %37 }
  0x8f   :  { %v40_v10 = vmul.f32 %v38_v9, %v29_v0  ;;  %v41_v11 = vmul.f32 %v38_v9, %v30_v1 }
  0xf2   :  { %v46_v12 = vpop.permute.xlu1 %45 }
  0xf3   :  { %v48_v13 = vadd.f32 %v46_v12, %v40_v10  ;;  %v49_v14 = vadd.f32 %v46_v12, %v41_v11 }
  0xf5   :  { %50 = vst [vmem:[#allocation5] sm:$0xff] %v48_v13 }
  0xf6   :  { %51 = vst [vmem:[#allocation5 + $0x8] sm:$0xff] %v49_v14 }
  0xf7   :  { %62 = dma.vmem_to_hbm [thread:$0]  %s58_s16, 256, %s60_s19, [#allocation4]  }
  0xf8   :  { %126 = dma.done.wait [#allocation4], 256  }
  0xf9   :  { %127 = vsyncadd [#allocation4], 4294967040 }
  0xfa   :  { %67 = vsyncpa [#allocation3], 1 }
  0xfb   :  { %68 = vsyncpa [#allocation4], 1 }

</bundles_post_ra>
